<compile_context>
chip_gen: v6e
topology: v6e:2x2x1
jax: 0.10.0
libtpu: 0.0.40
codegen_flags: <defaults>
</compile_context>

<pallas_src>
import functools

import jax
import jax.numpy as jnp
from jax.experimental import pallas as pl
from jax.experimental.pallas import tpu as pltpu


def _round_up(v, m):
    return -(-v // m) * m


def _vmem_budgets():
    """Generation-aware (vmem_limit_bytes, per-kernel tile byte budget)."""
    cap = 64 << 20
    try:
        info = pltpu.get_tpu_info()
        cap = int(getattr(info, "vmem_capacity_bytes", cap))
    except Exception:
        pass                                   # conservative fallback below
    if cap <= (64 << 20):                      # v7x-class part: 64 MiB VMEM per TC
        return 40 << 20, 22 << 20
    return 96 << 20, 56 << 20                  # v5e / v6e: 128 MiB VMEM


_VMEM_LIMIT_BYTES, _TILE_BYTE_BUDGET = _vmem_budgets()


def _pick_rows(h, target, even):
    """Largest divisor of `h` that is <= target (and even when `even`)."""
    lo = 2 if even else 1
    t = int(max(lo, min(h, target)))
    while t > lo:
        if h % t == 0 and (not even or t % 2 == 0):
            return t
        t -= 1
    return lo


def _fc_tile(dim, target):
    """FC tile: the full dim if small enough, else the largest multiple-of-128
    divisor <= target (TPU lane constraint: a partial block's minor dim must be a
    multiple of 128).  Falls back to the full dim (single tile) when no such
    divisor exists; the budget-aware caller keeps that case from exploding."""
    if dim <= target:
        return dim
    t = (int(target) // 128) * 128
    while t >= 128:
        if dim % t == 0:
            return t
        t -= 128
    return dim


# ---------------------------------------------------------------------------
# Kernel 1: fused 3x3 same-conv + (folded) BatchNorm + ReLU (+ optional fused
# 2x2/stride-2 max-pool), row-tiled with vertical halo rows, optional Cout tiling.
# ---------------------------------------------------------------------------
def _conv3x3_bn_relu_kernel(xm_ref, xt_ref, xb_ref, w_ref, b_ref, o_ref, *,
                            fold_dh, pool):
    # xm_ref: (1, TH, Wp, Cin)   row tile of the (width-padded, unpadded-H) input
    # xt_ref: (1, 1, Wp, Cin)    halo row above the tile (zeros at the image top)
    # xb_ref: (1, 1, Wp, Cin)    halo row below the tile (zeros at the image bottom)
    # w_ref : (9*Cin, TCo) if fold_dh else (3, 3*Cin, TCo)   BN-folded weights
    # b_ref : (1, TCo)           BN-folded bias (f32)
    # o_ref : (1, TH, Wp, TCo)   or (1, TH//2, Wp//2, TCo) when pool=True
    _, TH, Wp, Cin = xm_ref.shape
    TCo = o_ref.shape[-1]

    # (TH+2, Wp, Cin) window with vertical halo rows; horizontal halo columns are
    # zero-filled in-register.  The three width taps are folded into the matmul
    # contraction dim with a single channel concat: K layout = [dw*Cin + cin].
    rows = jnp.concatenate([xt_ref[0], xm_ref[0], xb_ref[0]], axis=0)
    zc = jnp.zeros((TH + 2, 1, Cin), rows.dtype)
    win3 = jnp.concatenate(
        [jnp.concatenate([zc, rows[:, :Wp - 1, :]], axis=1),    # w-1 neighbour
         rows,                                                  # w
         jnp.concatenate([rows[:, 1:, :], zc], axis=1)],        # w+1 neighbour
        axis=-1)                                                # (TH+2, Wp, 3*Cin)
    # Free reshape (Wp is a multiple of 8): matmul rows are the (h, w) positions.
    flat = win3.reshape((TH + 2) * Wp, 3 * Cin)

    if fold_dh:
        # Shallow Cin: fold the dh taps too -> one K = 9*Cin matmul.  The three
        # row-shifted slices below start at multiples of Wp (sublane-aligned).
        patch = jnp.concatenate(
            [flat[0:TH * Wp], flat[Wp:(TH + 1) * Wp], flat[2 * Wp:(TH + 2) * Wp]],
            axis=-1)                                            # (TH*Wp, 9*Cin)
        acc = jnp.dot(patch, w_ref[...], preferred_element_type=jnp.float32)
    else:
        # Deep Cin: one matmul per dh over all TH+2 rows, then take the aligned
        # row-slice of the matmul *output* (no shifted-input re-materialization).
        acc = jnp.dot(flat, w_ref[0],
                      preferred_element_type=jnp.float32)[0:TH * Wp]
        acc = acc + jnp.dot(flat, w_ref[1],
                            preferred_element_type=jnp.float32)[Wp:(TH + 1) * Wp]
        acc = acc + jnp.dot(flat, w_ref[2],
                            preferred_element_type=jnp.float32)[2 * Wp:(TH + 2) * Wp]

    acc = acc + b_ref[...]                    # BN-folded bias, f32
    acc = jnp.maximum(acc, 0.0)               # ReLU
    y = acc.astype(o_ref.dtype)

    if pool:
        THo, Wpo = TH // 2, Wp // 2
        y = y.reshape(THo, 2, Wp, TCo)                # free leading-dim split
        y = jnp.maximum(y[:, 0], y[:, 1])             # pool row pairs
        y = y.reshape(THo, Wpo, 2 * TCo)              # fold column pairs into lanes
        y = jnp.maximum(y[..., :TCo], y[..., TCo:])   # pool column pairs
        o_ref[0] = y
    else:
        o_ref[0] = y.reshape(TH, Wp, TCo)


def conv3x3_bn_relu(x, w, b, *, pool=False, max_rows=None):
    """x: (N,H,W,Cin) bf16; w: (3,3,Cin,Cout) BN-folded bf16; b: (Cout,) f32.
    Computes ReLU(BN(conv3x3_same(x))); when pool=True the following 2x2/stride-2
    max-pool is fused into the epilogue (saves an HBM round trip)."""
    N, H, W, Cin = x.shape
    Cout = w.shape[-1]
    dt = x.dtype.itemsize

    if pool:
        assert H % 2 == 0 and W % 2 == 0, (H, W)

    # Pad the width to a multiple of 8 (sublane tile) so in-kernel reshapes around
    # the matmul stay layout-preserving (W in {28, 14, 4} would otherwise relayout).
    Wp = _round_up(W, 8)
    if Wp != W:
        x = jnp.pad(x, ((0, 0), (0, 0), (0, Wp - W), (0, 0)))

    fold_dh = (9 * Cin <= 576)      # full im2col (single matmul) for Cin <= 64

    # Row-tile sizing: count the in-kernel intermediates, not just BlockSpec buffers.
    def _row_bytes(tco):
        r = 2 * Cin * dt            # input tile, double buffered
        r += 4 * Cin * dt           # win3 (3*Cin) + shifted-window temporaries
        if fold_dh:
            r += 9 * Cin * dt       # im2col patch
            r += 2 * tco * 4        # f32 matmul result + slack
        else:
            r += 3 * tco * 4        # f32 accumulator + live matmul result
        r += 3 * tco * dt           # bf16 output tile (double buffered) + pool tmp
        return Wp * r

    fixed = 2 * 9 * Cin * Cout * dt + 4 * Wp * Cin * dt   # weights (dbuf) + halo rows
    target = max(2, (_TILE_BYTE_BUDGET - fixed) // _row_bytes(Cout))
    if max_rows is not None:
        target = min(target, max_rows)
    TH = _pick_rows(H, target, even=pool)
    nT = H // TH

    # Cout tiling: when the (N, row-tile) grid has too few steps to pipeline (small
    # batch / small spatial extent, e.g. VGG block4/5 at N=1), add a 128-wide Cout
    # axis so weight DMA overlaps compute and both v7x TensorCores get work.
    TCo = Cout
    if N * nT < 8 and Cout >= 256 and Cout % 128 == 0:
        TCo = 128
    nCo = Cout // TCo

    wk = w.reshape(9 * Cin, Cout) if fold_dh else w.reshape(3, 3 * Cin, Cout)
    w_spec = (pl.BlockSpec((9 * Cin, TCo), lambda co, n, i: (0, co)) if fold_dh
              else pl.BlockSpec((3, 3 * Cin, TCo), lambda co, n, i: (0, 0, co)))

    # Per-tile vertical halo rows (tiny side arrays; no padded-activation HBM copy).
    zero_row = jnp.zeros((N, 1, Wp, Cin), x.dtype)
    top = jnp.concatenate([zero_row, x[:, TH - 1::TH][:, :nT - 1]], axis=1)
    bot = jnp.concatenate([x[:, TH::TH][:, :nT - 1], zero_row], axis=1)

    Hs, Ws = (H // 2, Wp // 2) if pool else (H, Wp)
    THo = TH // 2 if pool else TH

    out = pl.pallas_call(
        functools.partial(_conv3x3_bn_relu_kernel, fold_dh=fold_dh, pool=pool),
        out_shape=jax.ShapeDtypeStruct((N, Hs, Ws, Cout), x.dtype),
        grid=(nCo, N, nT),
        in_specs=[
            pl.BlockSpec((1, TH, Wp, Cin), lambda co, n, i: (n, i, 0, 0)),
            pl.BlockSpec((1, 1, Wp, Cin), lambda co, n, i: (n, i, 0, 0)),
            pl.BlockSpec((1, 1, Wp, Cin), lambda co, n, i: (n, i, 0, 0)),
            w_spec,
            pl.BlockSpec((1, TCo), lambda co, n, i: (0, co)),
        ],
        out_specs=pl.BlockSpec((1, THo, Ws, TCo), lambda co, n, i: (n, i, 0, co)),
        compiler_params=pltpu.CompilerParams(
            dimension_semantics=("parallel", "parallel", "parallel"),
            vmem_limit_bytes=_VMEM_LIMIT_BYTES),
    )(x, top, bot, wk, b.reshape(1, Cout))

    if Wp != W:
        w_real = W // 2 if pool else W
        out = out[:, :, :w_real, :]
    return out


# ---------------------------------------------------------------------------
# Kernel 2: standalone 2x2 max-pool (fallback only; pools are normally fused
# into the preceding conv kernel).
# ---------------------------------------------------------------------------
def _maxpool2x2_kernel(x_ref, o_ref):
    # x_ref: (1, TP, 2, Wo, 2*C); o_ref: (1, TP, Wo, C)
    C = o_ref.shape[-1]
    v = x_ref[0]
    o_ref[0] = jnp.maximum(jnp.maximum(v[:, 0, :, :C], v[:, 0, :, C:]),
                           jnp.maximum(v[:, 1, :, :C], v[:, 1, :, C:]))


def maxpool2x2(x):
    N, H, W_, C = x.shape
    Ho, Wo = H // 2, W_ // 2
    # Free, row-major-compatible reshape: folds the 2x2 window into leading/lane dims.
    xr = x.reshape(N, Ho, 2, Wo, 2 * C)
    per_row = Wo * 2 * C * x.dtype.itemsize * 4 + 1
    TP = _pick_rows(Ho, max(1, _TILE_BYTE_BUDGET // per_row), even=False)
    nT = Ho // TP
    return pl.pallas_call(
        _maxpool2x2_kernel,
        out_shape=jax.ShapeDtypeStruct((N, Ho, Wo, C), x.dtype),
        grid=(N, nT),
        in_specs=[pl.BlockSpec((1, TP, 2, Wo, 2 * C), lambda n, i: (n, i, 0, 0, 0))],
        out_specs=pl.BlockSpec((1, TP, Wo, C), lambda n, i: (n, i, 0, 0)),
        compiler_params=pltpu.CompilerParams(
            dimension_semantics=("parallel", "parallel"),
            vmem_limit_bytes=_VMEM_LIMIT_BYTES),
    )(xr)


# ---------------------------------------------------------------------------
# Kernel 3: fully-connected layer (x @ W + b), K/O tiled with f32 accumulator,
# optional fused ReLU.  Weight tiles sized to several MB per grid step.
# ---------------------------------------------------------------------------
def _linear_kernel(x_ref, w_ref, b_ref, o_ref, acc_ref, *, relu):
    k = pl.program_id(1)

    @pl.when(k == 0)
    def _():
        acc_ref[...] = jnp.zeros_like(acc_ref)

    acc_ref[...] += jnp.dot(x_ref[...], w_ref[...],
                            preferred_element_type=jnp.float32)

    @pl.when(k == pl.num_programs(1) - 1)
    def _():
        y = acc_ref[...] + b_ref[...]
        if relu:
            y = jnp.maximum(y, 0.0)
        o_ref[...] = y.astype(o_ref.dtype)


def linear(x, w, b, *, relu=False, out_dtype=None, max_tk=3584, max_to=2048):
    N, F = x.shape
    O = w.shape[1]
    out_dtype = out_dtype if out_dtype is not None else x.dtype
    xdt = x.dtype.itemsize
    wdt = w.dtype.itemsize
    odt = jnp.dtype(out_dtype).itemsize

    TO = _fc_tile(O, max_to)
    # Budget-aware K tile: keep the double-buffered weight + activation tiles (plus
    # the f32 accumulator and output) under the per-kernel VMEM budget while making
    # each step's weight DMA large enough to dwarf per-step pipeline overhead.
    fixed = 2 * N * TO * odt + N * TO * 4 + 2 * TO * 4
    per_k = 2 * TO * wdt + 2 * N * xdt
    tk_cap = max(128, (_TILE_BYTE_BUDGET - fixed) // per_k)
    TK = _fc_tile(F, min(max_tk, tk_cap))
    nK, nO = F // TK, O // TO

    return pl.pallas_call(
        functools.partial(_linear_kernel, relu=relu),
        out_shape=jax.ShapeDtypeStruct((N, O), out_dtype),
        grid=(nO, nK),
        in_specs=[
            pl.BlockSpec((N, TK), lambda j, k: (0, k)),
            pl.BlockSpec((TK, TO), lambda j, k: (k, j)),
            pl.BlockSpec((1, TO), lambda j, k: (0, j)),
        ],
        out_specs=pl.BlockSpec((N, TO), lambda j, k: (0, j)),
        scratch_shapes=[pltpu.VMEM((N, TO), jnp.float32)],
        compiler_params=pltpu.CompilerParams(
            dimension_semantics=("parallel", "arbitrary"),
            vmem_limit_bytes=_VMEM_LIMIT_BYTES),
    )(x, w, b.reshape(1, O))


# ---------------------------------------------------------------------------
# Parameter construction (deterministic, synthetic) with BN folded into conv.
# ---------------------------------------------------------------------------
def init_params(key, config, img_channels, num_classes, fc_hidden, flat_features,
                compute_dtype=jnp.bfloat16):
    eps = 1e-5
    params = {"conv": []}
    in_c = img_channels
    for item in config:
        if isinstance(item, int):
            out_c = item
            key, kw, kb = jax.random.split(key, 3)
            w = jax.random.normal(kw, (3, 3, in_c, out_c), jnp.float32) * (
                (9.0 * in_c) ** -0.5)
            b = jax.random.normal(kb, (out_c,), jnp.float32) * 0.01
            # BatchNorm2d eval-mode params: gamma=1, beta=0, mean=0, var=1.
            gamma = jnp.ones((out_c,), jnp.float32)
            beta = jnp.zeros((out_c,), jnp.float32)
            mean = jnp.zeros((out_c,), jnp.float32)
            var = jnp.ones((out_c,), jnp.float32)
            scale = gamma / jnp.sqrt(var + eps)
            params["conv"].append({
                "type": "conv_bn_relu",
                "w": (w * scale[None, None, None, :]).astype(compute_dtype),
                "b": beta + (b - mean) * scale,          # keep bias in f32
            })
            in_c = out_c
        elif item == "Pool":
            params["conv"].append({"type": "pool"})
        else:
            raise ValueError(f"bad config entry: {item}")

    def _lin(k, fin, fout):
        kw, kb = jax.random.split(k)
        w = (jax.random.normal(kw, (fin, fout), jnp.float32) * (fin ** -0.5)
             ).astype(compute_dtype)
        b = jax.random.normal(kb, (fout,), jnp.float32) * 0.01
        return w, b

    key, k1, k2, k3 = jax.random.split(key, 4)
    params["fc1"] = _lin(k1, flat_features, fc_hidden)
    params["fc2"] = _lin(k2, fc_hidden, fc_hidden)
    params["fc3"] = _lin(k3, fc_hidden, num_classes)
    return params


# ---------------------------------------------------------------------------
# Forward pass (mirrors VGG16.forward).
# ---------------------------------------------------------------------------
def vgg16_forward(params, x_nchw, *, conv_max_rows=None, fc_max_tk=3584,
                  fc_max_to=2048, compute_dtype=jnp.bfloat16):
    # Accept NCHW like PyTorch; the conv stack runs in NHWC (channels on lanes).
    x = jnp.transpose(x_nchw, (0, 2, 3, 1)).astype(compute_dtype)
    layers = params["conv"]
    i = 0
    while i < len(layers):
        layer = layers[i]
        if layer["type"] == "conv_bn_relu":
            fuse = (i + 1 < len(layers) and layers[i + 1]["type"] == "pool")
            x = conv3x3_bn_relu(x, layer["w"], layer["b"], pool=fuse,
                                max_rows=conv_max_rows)
            i += 2 if fuse else 1
        else:
            x = maxpool2x2(x)    # fallback: a Pool not preceded by a conv
            i += 1
    # Flatten in PyTorch's NCHW order: (N, C*H*W).
    n = x.shape[0]
    x = jnp.transpose(x, (0, 3, 1, 2)).reshape(n, -1)

    w1, b1 = params["fc1"]
    w2, b2 = params["fc2"]
    w3, b3 = params["fc3"]
    x = linear(x, w1, b1, relu=True, max_tk=fc_max_tk, max_to=fc_max_to)
    # Dropout(p=0.5): identity in inference mode.
    x = linear(x, w2, b2, relu=True, max_tk=fc_max_tk, max_to=fc_max_to)
    # Dropout(p=0.5): identity in inference mode.
    x = linear(x, w3, b3, relu=False, max_tk=fc_max_tk, max_to=fc_max_to,
               out_dtype=jnp.float32)
    return x


def _reference_forward(params, x_nchw):
    """Pure-XLA f32 reference (same folded params), used only as a sanity check."""
    x = jnp.transpose(x_nchw, (0, 2, 3, 1)).astype(jnp.float32)
    for layer in params["conv"]:
        if layer["type"] == "conv_bn_relu":
            y = jax.lax.conv_general_dilated(
                x, layer["w"].astype(jnp.float32), window_strides=(1, 1),
                padding="SAME", dimension_numbers=("NHWC", "HWIO", "NHWC"))
            x = jnp.maximum(y + layer["b"][None, None, None, :], 0.0)
        else:
            n, h, w_, c = x.shape
            x = x.reshape(n, h // 2, 2, w_ // 2, 2, c).max(axis=(2, 4))
    n = x.shape[0]
    x = jnp.transpose(x, (0, 3, 1, 2)).reshape(n, -1)
    for name, relu in (("fc1", True), ("fc2", True), ("fc3", False)):
        w, b = params[name]
        x = x @ w.astype(jnp.float32) + b
        if relu:
            x = jnp.maximum(x, 0.0)
    return x


if __name__ == "__main__":
    # Full VGG16 reference config would be:
    #   [64,64,'Pool',128,128,'Pool',256,256,256,'Pool',512,512,512,'Pool',512,512,512,'Pool']
    # with x = (32, 3, 224, 224).  Scaled-down config + small shapes for a fast demo.
    # conv_max_rows / fc_max_tk are set small so that the row-tiled halo path, the
    # fused conv+pool epilogue, the Cout-tiled grid (last block, Cout=256), the
    # width-padding path (W=4 -> 8) and the K-tiled FC accumulator are all exercised.
    config = [8, 8, "Pool", 16, 16, "Pool", 256, 256, "Pool"]
    N, C, H, W = 2, 3, 16, 16
    num_classes = 10
    fc_hidden = 128

    n_pool = sum(1 for c in config if c == "Pool")
    last_c = [c for c in config if isinstance(c, int)][-1]
    flat_features = last_c * (H // 2 ** n_pool) * (W // 2 ** n_pool)

    key = jax.random.PRNGKey(0)
    key, kx = jax.random.split(key)
    x = jax.random.uniform(kx, (N, C, H, W), dtype=jnp.float32)  # like torch.rand

    params = init_params(key, config, C, num_classes, fc_hidden, flat_features)

    out = vgg16_forward(params, x, conv_max_rows=8, fc_max_tk=256)
    out = jax.block_until_ready(out)
    assert out.shape == (N, num_classes), out.shape
    assert bool(jnp.all(jnp.isfinite(out)))

    # Numerical sanity check against a pure-XLA f32 reference (bf16-tolerant bound).
    ref = _reference_forward(params, x)
    err = float(jnp.max(jnp.abs(out - ref)))
    tol = 5e-2 + 1e-1 * float(jnp.max(jnp.abs(ref)))
    assert err <= tol, (err, tol)

    print("KERNEL_OK")
</pallas_src>

<mosaic_0001>
module attributes {stable_mosaic.version = 11 : i64} {
  func.func @_conv3x3_bn_relu_kernel(%arg0: i32, %arg1: i32, %arg2: i32, %arg3: memref<1x8x16x3xbf16, #tpu.memory_space<vmem>>, %arg4: memref<1x1x16x3xbf16, #tpu.memory_space<vmem>>, %arg5: memref<1x1x16x3xbf16, #tpu.memory_space<vmem>>, %arg6: memref<27x8xbf16, #tpu.memory_space<vmem>>, %arg7: memref<1x8xf32, #tpu.memory_space<vmem>>, %arg8: memref<1x8x16x8xbf16, #tpu.memory_space<vmem>>) attributes {dimension_semantics = [#tpu.dimension_semantics<parallel>, #tpu.dimension_semantics<parallel>, #tpu.dimension_semantics<parallel>], iteration_bounds = array<i64: 1, 2, 2>, scalar_prefetch = 0 : i64, scratch_operands = 0 : i64, tpu.core_type = #tpu.core_type<tc>, window_params = [{transform_indices = @transform_0, window_bounds = array<i64: 1, 8, 16, 3>}, {transform_indices = @transform_1, window_bounds = array<i64: 1, 1, 16, 3>}, {transform_indices = @transform_2, window_bounds = array<i64: 1, 1, 16, 3>}, {transform_indices = @transform_3, window_bounds = array<i64: 27, 8>}, {transform_indices = @transform_4, window_bounds = array<i64: 1, 8>}, {transform_indices = @transform_5, window_bounds = array<i64: 1, 8, 16, 8>}]} {
    %c0 = arith.constant 0 : index
    %c0_0 = arith.constant 0 : index
    %c0_1 = arith.constant 0 : index
    %c0_2 = arith.constant 0 : index
    %0 = vector.load %arg4[%c0, %c0_0, %c0_1, %c0_2] : memref<1x1x16x3xbf16, #tpu.memory_space<vmem>>, vector<1x1x16x3xbf16>
    %1 = vector.shape_cast %0 : vector<1x1x16x3xbf16> to vector<1x16x3xbf16>
    %c0_3 = arith.constant 0 : index
    %c0_4 = arith.constant 0 : index
    %c0_5 = arith.constant 0 : index
    %c0_6 = arith.constant 0 : index
    %2 = vector.load %arg3[%c0_3, %c0_4, %c0_5, %c0_6] : memref<1x8x16x3xbf16, #tpu.memory_space<vmem>>, vector<1x8x16x3xbf16>
    %3 = vector.shape_cast %2 : vector<1x8x16x3xbf16> to vector<8x16x3xbf16>
    %c0_7 = arith.constant 0 : index
    %c0_8 = arith.constant 0 : index
    %c0_9 = arith.constant 0 : index
    %c0_10 = arith.constant 0 : index
    %4 = vector.load %arg5[%c0_7, %c0_8, %c0_9, %c0_10] : memref<1x1x16x3xbf16, #tpu.memory_space<vmem>>, vector<1x1x16x3xbf16>
    %5 = vector.shape_cast %4 : vector<1x1x16x3xbf16> to vector<1x16x3xbf16>
    %6 = tpu.concatenate %1, %3, %5 in 0 : vector<1x16x3xbf16>, vector<8x16x3xbf16>, vector<1x16x3xbf16> -> vector<10x16x3xbf16>
    %cst = arith.constant 0.000000e+00 : bf16
    %7 = vector.broadcast %cst : bf16 to vector<10x1x3xbf16>
    %8 = vector.extract_strided_slice %6 {offsets = [0, 0, 0], sizes = [10, 15, 3], strides = [1, 1, 1]} : vector<10x16x3xbf16> to vector<10x15x3xbf16>
    %9 = tpu.concatenate %7, %8 in 1 : vector<10x1x3xbf16>, vector<10x15x3xbf16> -> vector<10x16x3xbf16>
    %10 = vector.extract_strided_slice %6 {offsets = [0, 1, 0], sizes = [10, 15, 3], strides = [1, 1, 1]} : vector<10x16x3xbf16> to vector<10x15x3xbf16>
    %11 = tpu.concatenate %10, %7 in 1 : vector<10x15x3xbf16>, vector<10x1x3xbf16> -> vector<10x16x3xbf16>
    %12 = tpu.concatenate %9, %6, %11 in 2 : vector<10x16x3xbf16>, vector<10x16x3xbf16>, vector<10x16x3xbf16> -> vector<10x16x9xbf16>
    %13 = vector.shape_cast %12 : vector<10x16x9xbf16> to vector<160x9xbf16>
    %14 = vector.extract_strided_slice %13 {offsets = [0, 0], sizes = [128, 9], strides = [1, 1]} : vector<160x9xbf16> to vector<128x9xbf16>
    %15 = vector.extract_strided_slice %13 {offsets = [16, 0], sizes = [128, 9], strides = [1, 1]} : vector<160x9xbf16> to vector<128x9xbf16>
    %16 = vector.extract_strided_slice %13 {offsets = [32, 0], sizes = [128, 9], strides = [1, 1]} : vector<160x9xbf16> to vector<128x9xbf16>
    %17 = tpu.concatenate %14, %15, %16 in 1 : vector<128x9xbf16>, vector<128x9xbf16>, vector<128x9xbf16> -> vector<128x27xbf16>
    %c0_11 = arith.constant 0 : index
    %c0_12 = arith.constant 0 : index
    %18 = vector.load %arg6[%c0_11, %c0_12] : memref<27x8xbf16, #tpu.memory_space<vmem>>, vector<27x8xbf16>
    %cst_13 = arith.constant dense<0.000000e+00> : vector<128x8xf32>
    %19 = tpu.matmul %17, %18, %cst_13 {dimension_numbers = #tpu.dot_dimension_numbers<[1], [0], [0], [1], [0, 0, 1, 1], [], []>} : vector<128x27xbf16>, vector<27x8xbf16>, vector<128x8xf32> -> vector<128x8xf32>
    %c0_14 = arith.constant 0 : index
    %c0_15 = arith.constant 0 : index
    %20 = vector.load %arg7[%c0_14, %c0_15] : memref<1x8xf32, #tpu.memory_space<vmem>>, vector<1x8xf32>
    %21 = vector.broadcast %20 : vector<1x8xf32> to vector<128x8xf32>
    %22 = arith.addf %19, %21 : vector<128x8xf32>
    %cst_16 = arith.constant 0.000000e+00 : f32
    %23 = vector.broadcast %cst_16 : f32 to vector<128x8xf32>
    %24 = arith.maximumf %22, %23 : vector<128x8xf32>
    %25 = arith.truncf %24 : vector<128x8xf32> to vector<128x8xbf16>
    %26 = vector.shape_cast %25 : vector<128x8xbf16> to vector<8x16x8xbf16>
    %c0_17 = arith.constant 0 : index
    %c0_18 = arith.constant 0 : index
    %c0_19 = arith.constant 0 : index
    %c0_20 = arith.constant 0 : index
    %27 = vector.load %arg8[%c0_17, %c0_18, %c0_19, %c0_20] : memref<1x8x16x8xbf16, #tpu.memory_space<vmem>>, vector<1x8x16x8xbf16>
    %28 = vector.shape_cast %27 : vector<1x8x16x8xbf16> to vector<8x16x8xbf16>
    %29 = vector.shape_cast %26 : vector<8x16x8xbf16> to vector<1x8x16x8xbf16>
    tpu.vector_store %arg8[%c0_17, %c0_18, %c0_19, %c0_20], %29 {strides = array<i32>} : memref<1x8x16x8xbf16, #tpu.memory_space<vmem>>, vector<1x8x16x8xbf16>,
    return
  }
  func.func @transform_0(%arg0: i32, %arg1: i32, %arg2: i32) -> (i32, i32, i32, i32) {
    %c0_i32 = arith.constant 0 : i32
    %c0_i32_0 = arith.constant 0 : i32
    %c0_i32_1 = arith.constant 0 : i32
    return %arg1, %arg2, %c0_i32, %c0_i32_0 : i32, i32, i32, i32
  }
  func.func @transform_1(%arg0: i32, %arg1: i32, %arg2: i32) -> (i32, i32, i32, i32) {
    %c0_i32 = arith.constant 0 : i32
    %c0_i32_0 = arith.constant 0 : i32
    %c0_i32_1 = arith.constant 0 : i32
    return %arg1, %arg2, %c0_i32, %c0_i32_0 : i32, i32, i32, i32
  }
  func.func @transform_2(%arg0: i32, %arg1: i32, %arg2: i32) -> (i32, i32, i32, i32) {
    %c0_i32 = arith.constant 0 : i32
    %c0_i32_0 = arith.constant 0 : i32
    %c0_i32_1 = arith.constant 0 : i32
    return %arg1, %arg2, %c0_i32, %c0_i32_0 : i32, i32, i32, i32
  }
  func.func @transform_3(%arg0: i32, %arg1: i32, %arg2: i32) -> (i32, i32) {
    %c0_i32 = arith.constant 0 : i32
    %c0_i32_0 = arith.constant 0 : i32
    return %c0_i32, %arg0 : i32, i32
  }
  func.func @transform_4(%arg0: i32, %arg1: i32, %arg2: i32) -> (i32, i32) {
    %c0_i32 = arith.constant 0 : i32
    %c0_i32_0 = arith.constant 0 : i32
    return %c0_i32, %arg0 : i32, i32
  }
  func.func @transform_5(%arg0: i32, %arg1: i32, %arg2: i32) -> (i32, i32, i32, i32) {
    %c0_i32 = arith.constant 0 : i32
    %c0_i32_0 = arith.constant 0 : i32
    return %arg1, %arg2, %c0_i32, %arg0 : i32, i32, i32, i32
  }
}

</mosaic_0001>

<bundles_post_ra>
// kernel: tpu_custom_call.1
= control target key start
LH: loop header
LB: loop body
LE: loop exit
PB: predicated region body
PF: predicated region fallthrough
CT: control target
= control target key end

     0   :  { %s1430_s18 = smov 0   ;;  %s1432_s19 = smov 0   ;;  %s1795_s0 = inlined_call_operand.vmem [shape: bf16[2,16,16,3], index: 0, kind: input, shape index: {}]   ;;  %s1796_s1 = inlined_call_operand.vmem [shape: bf16[2,2,16,3], index: 1, kind: input, shape index: {}]   ;;  %s1797_s2 = inlined_call_operand.vmem [shape: bf16[2,2,16,3], index: 2, kind: input, shape index: {}]   ;;  %s1798_s3 = inlined_call_operand.vmem [shape: bf16[27,8], index: 3, kind: input, shape index: {}]   ;;  %s1799_s4 = inlined_call_operand.vmem [shape: f32[1,8], index: 4, kind: input, shape index: {}]   ;;  %s1800_s5 = inlined_call_operand.vmem [shape: bf16[2,16,16,8], index: 5, kind: output, shape index: {}]  }
   0x1   :  { %s1434_s20 = smov 0   ;;  %s1436_s21 = smov 0  }
   0x2   :  { %s1438_s22 = smov 0  }
   0x3 LB: > { %s27_s23 = sadd.s32 1, %s1385_s20  ;;  %s30_s24 = sadd.s32 1, %s1389_s21  ;;  %s1393_s22 = sphi %s1438_s22, %s15_s22   ;;  %s1389_s21 = sphi %s1436_s21, %s1808_s21   ;;  %s1385_s20 = sphi %s1434_s20, %s1807_s20   ;;  %s1381_s19 = sphi %s1432_s19, %s1806_s19   ;;  %s1377_s18 = sphi %s1430_s18, %s1805_s18  }
   0x4   : > { %p28_p0 = scmp.ge.s32.totalorder %s27_s23, 2  ;;  %p1194_p1 = scmp.ge.s32.totalorder %s1393_s22, 1 }
   0x5   : > { %p267_p2 = scmp.lt.s32.totalorder %s1393_s22, 5 }
   0x6   : > { %s1810_s23 = smov (%p28_p0, %s27_s23), 0  ;;  %s1812_s24 = smov (!%p28_p0, %s30_s24), %s1389_s21 }
   0x7   : > { %p268_p3 = pnand %p1194_p1, %p267_p2  ;;  %p32_p4 = scmp.ge.s32.totalorder %s1812_s24, 2 }
   0x8   : > { %s1195_s25 = sshll.u32 (!%p268_p3), %s1377_s18, 3  ;;  %p334_p5 = scmp.lt.s32.totalorder (!%p268_p3), %s1381_s19, 1 }
   0x9   : > { %s1814_s24 = smov (%p32_p4, %s1812_s24), 0  ;;  %271 = sbr.rel (%p268_p3) target bundleno = 499 (0x1f3), region = 40 }
   0xa   : > { %p336_p6 = scmp.lt.s32.totalorder (!%p268_p3), %s1195_s25, 15  ;;  %p346_p7 = scmp.lt.s32.totalorder (!%p268_p3), %s1377_s18, 1 }
   0xb   : > { %s1395_s8 = smov (!%p268_p3), 3   ;;  %s1396_s16 = smov (!%p268_p3), 6  }
   0xc   : > { %s1398_s6 = smov (!%p268_p3), 9  }
   0xe   : > { %s1816_s19 = smov (!%p334_p5, %s1381_s19), 1  ;;  %s1818_s25 = smov (!%p336_p6, %s1195_s25), 15  ;;  %vm578_vm0 = vsmask.f32 7424  ;;  %vm577_vm1 = vcmask 1047552   ;;  %vm534_vm3 = vcmask 1040384  }
   0xf   : > { %s1197_s26 = sshll.u32 %s1816_s19, 5  ;;  %s1196_s27 = sshll.u32 %s1818_s25, 1  ;;  %vm1512_vm2 = vmand %vm577_vm1, %vm578_vm0  ;;  %vm535_vm4 = vsmask.f32 256  ;;  %vm806_vm6 = vcmask 1044480   ;;  %vm807_vm7 = vcmask 1045504  }
  0x10   : > { %s1466_s28 = sadd.s32 %s1197_s26, %s1196_s27  ;;  %s1820_s18 = smov (!%p346_p7, %s1377_s18), 1  ;;  %vm1581_vm5 = vmand %vm534_vm3, %vm535_vm4  ;;  %vm640_vm8 = vcmask 23552   ;;  %vm671_vm9 = vcmask 48128   ;;  %vm733_vm10 = vcmask 72704   ;;  %vm750_vm11 = vcmask 146432  }
  0x11   : > { %s1198_s29 = sshll.u32 %s1466_s28, 2  ;;  %s1200_s9 = sshll.u32 %s1816_s19, 2  ;;  %vm789_vm12 = vcmask 220160   ;;  %vm990_vm13 = vcmask 60416  }
  0x12   : > { %s1474_s7 = scalar_lea.vmem %s1795_s0, %s1198_s29  ;;  %s1199_s10 = sshll.u32 %s1820_s18, 1 }
  0x13   : > { %v1343_v0 = vld [vmem:[%s1474_s7 + $0x8] sm:$0xff]   ;;  %v1478_v1 = vld [vmem:[%s1474_s7] sm:$0xff]   ;;  %v1498_v6 = vld [vmem:[%s1474_s7 + $0x30] sm:$0xff]   ;;  %s350_s11 = sadd.s32 %s1200_s9, %s1199_s10 }
  0x14   : > { %594 = vrot.lane.b32.xlu1 %v1343_v0, %s1395_s8  ;;  %v1483_v2 = vld [vmem:[%s1474_s7 + $0x28] sm:$0xff]   ;;  %592 = vrot.lane.b32.xlu0 %v1478_v1, %s1395_s8  ;;  %v1488_v3 = vld [vmem:[%s1474_s7 + $0x20] sm:$0xff]   ;;  %v462_v4 = vshrl.u32 %v1478_v1, 16  ;;  %v465_v5 = vshll.u32 %v1478_v1, 16  ;;  %v472_v13 = vshll.u32 %v1343_v0, 16  ;;  %v469_v16 = vshrl.u32 %v1343_v0, 16 }
  0x15   : > { %v490_v7 = vshrl.u32 %v1488_v3, 16  ;;  %v493_v8 = vshll.u32 %v1488_v3, 16  ;;  %v1505_v10 = vld [vmem:[%s1474_s7 + $0x10] sm:$0xff]   ;;  %v497_v11 = vshrl.u32 %v1483_v2, 16  ;;  %v500_v12 = vshll.u32 %v1483_v2, 16  ;;  %v1350_v26 = vld [vmem:[%s1474_s7 + $0x18] sm:$0xff]  }
  0x16   : > { %v549_v9 = vrot.slane %v465_v5, 1  ;;  %v464_v18 = vrot.slane %v462_v4, 7  ;;  %v551_v20 = vrot.slane %v472_v13, 1  ;;  %v507_v21 = vshll.u32 %v1498_v6, 16  ;;  %s1201_s12 = sshll.u32 %s350_s11, 2  ;;  %v1349_v37 = vld [vmem:[%s1474_s7 + $0x38] sm:$0xff]  }
  0x17   : > { %v557_v14 = vrot.slane %v493_v8, 1  ;;  %v559_v19 = vrot.slane %v500_v12, 1  ;;  %v471_v23 = vrot.slane %v469_v16, 7  ;;  %v504_v24 = vshrl.u32 %v1498_v6, 16  ;;  %s361_s15 = scalar_lea.vmem %s1797_s2, %s1201_s12  ;;  %s352_s19 = scalar_lea.vmem %s1796_s1, %s1201_s12 }
  0x18   : > { %602 = vrot.lane.b32.xlu1 %v1483_v2, %s1395_s8  ;;  %600 = vrot.lane.b32.xlu0 %v1488_v3, %s1395_s8  ;;  %v550_v15 = vor.u32 %v549_v9, %v462_v4  ;;  %v479_v25 = vshll.u32 %v1505_v10, 16  ;;  %v499_v27 = vrot.slane %v497_v11, 7  ;;  %v561_v29 = vrot.slane %v507_v21, 1  ;;  %v1351_v44 = vld [vmem:[%s361_s15] sm:$0xff]   ;;  %s1399_s7 = smov 18   ;;  %s1733_s12 = scalar_lea.vmem %s1800_s5, %s1198_s29 }
  0x19   : > { %v558_v22 = vor.u32 %v557_v14, %v490_v7  ;;  %v560_v28 = vor.u32 %v559_v19, %v497_v11  ;;  %v476_v30 = vshrl.u32 %v1505_v10, 16  ;;  %v552_v33 = vor.u32 %v551_v20, %v469_v16  ;;  %v1352_v61 = vld [vmem:[%s352_s19] sm:$0xff]  }
  0x1a   : > { %v581_v32 = vsel %vm1512_vm2, %v550_v15, 0  ;;  %v553_v34 = vrot.slane %v479_v25, 1  ;;  %v492_v35 = vrot.slane %v490_v7, 7  ;;  %v506_v36 = vrot.slane %v504_v24, 7 }
  0x1b   : > { %v585_v31 = vsel %vm1512_vm2, %v558_v22, 0  ;;  %v562_v38 = vor.u32 %v561_v29, %v504_v24  ;;  %v478_v39 = vrot.slane %v476_v30, 7  ;;  %v486_v40 = vshll.u32 %v1350_v26, 16  ;;  %v1353_v22 = vld [vmem:[%s1798_s3 + $0x8] sm:$0x3f]  }
  0x1c   : > { %604 = vrot.lane.b32.xlu1 %v1498_v6, %s1395_s8  ;;  %596 = vrot.lane.b32.xlu0 %v1505_v10, %s1395_s8  ;;  %v1535_v41 = vor.u32 %v472_v13, %v471_v23  ;;  %v586_v42 = vsel %vm1512_vm2, %v560_v28, 0  ;;  %v483_v43 = vshrl.u32 %v1350_v26, 16  ;;  %v511_v45 = vshrl.u32 %v1349_v37, 16 }
  0x1d   : > { %v1543_v46 = vor.u32 %v465_v5, %v464_v18  ;;  %v582_v47 = vsel %vm1512_vm2, %v552_v33, 0  ;;  %v554_v48 = vor.u32 %v553_v34, %v476_v30  ;;  %v1547_v49 = vor.u32 %v500_v12, %v499_v27 }
  0x1e   : > { %v485_v50 = vrot.slane %v483_v43, 7  ;;  %v518_v51 = vshrl.u32 %v1351_v44, 16  ;;  %v513_v52 = vrot.slane %v511_v45, 7  ;;  %v587_v53 = vsel %vm1512_vm2, %v562_v38, 0 }
  0x1f   : > { %v555_v54 = vrot.slane %v486_v40, 1  ;;  %v1552_v55 = vor.u32 %v493_v8, %v492_v35  ;;  %v1554_v56 = vor.u32 %v507_v21, %v506_v36  ;;  %v521_v58 = vshll.u32 %v1351_v44, 16 }
  0x20   : > { %630 = vrot.lane.b32.xlu1 %v585_v31, %s1396_s16  ;;  %622 = vrot.lane.b32.xlu0 %v581_v32, %s1396_s16  ;;  %v520_v57 = vrot.slane %v518_v51, 7  ;;  %v514_v59 = vshll.u32 %v1349_v37, 16  ;;  %v1557_v60 = vor.u32 %v479_v25, %v478_v39  ;;  %v583_v62 = vsel %vm1512_vm2, %v554_v48, 0  ;;  %v1354_v31 = vld [vmem:[%s1798_s3] sm:$0xff]  }
  0x21   : > { %v1564_v0 = vor.u32 %v486_v40, %v485_v50  ;;  %v556_v2 = vor.u32 %v555_v54, %v483_v43  ;;  %v565_v3 = vrot.slane %v521_v58, 1  ;;  %v458_v4 = vshll.u32 %v1352_v61, 16 }
  0x22   : > { %v1561_v63 = vor.u32 %v514_v59, %v513_v52  ;;  %v1566_v1 = vor.u32 %v521_v58, %v520_v57  ;;  %v563_v5 = vrot.slane %v514_v59, 1  ;;  %v455_v6 = vshrl.u32 %v1352_v61, 16 }
  0x23   : > { %v584_v7 = vsel %vm1512_vm2, %v556_v2, 0  ;;  %v566_v8 = vor.u32 %v565_v3, %v518_v51  ;;  %v547_v10 = vrot.slane %v458_v4, 1  ;;  %v1397_v23 = vmov 65535  }
  0x24   : > { %632 = vrot.lane.b32.xlu1 %v586_v42, %s1396_s16  ;;  %624 = vrot.lane.b32.xlu0 %v582_v47, %s1396_s16  ;;  %v457_v9 = vrot.slane %v455_v6, 7  ;;  %v564_v11 = vor.u32 %v563_v5, %v511_v45  ;;  %v808_v24 = vsel %vm806_vm6, 4294967295, %v1397_v23  ;;  %v542_v29 = vsel %vm1581_vm5, 0, %v1552_v55 }
  0x25   : > { %v589_v12 = vsel %vm1512_vm2, %v566_v8, 0  ;;  %v548_v13 = vor.u32 %v547_v10, %v455_v6  ;;  %v538_v32 = vsel %vm1581_vm5, 0, %v1543_v46  ;;  %v543_v36 = vsel %vm1581_vm5, 0, %v1547_v49 }
  0x26   : > { %v1577_v14 = vor.u32 %v458_v4, %v457_v9  ;;  %v588_v15 = vsel %vm1512_vm2, %v564_v11, 0  ;;  %v539_v39 = vsel %vm1581_vm5, 0, %v1535_v41  ;;  %v544_v48 = vsel %vm1581_vm5, 0, %v1554_v56 }
  0x27   : > { %v580_v19 = vsel %vm1512_vm2, %v548_v13, 0  ;;  %v540_v50 = vsel %vm1581_vm5, 0, %v1557_v60  ;;  %v545_v59 = vsel %vm1581_vm5, 0, %v1561_v63  ;;  %v541_v60 = vsel %vm1581_vm5, 0, %v1564_v0 }
  0x28   : > { %634 = vrot.lane.b32.xlu1 %v587_v53, %s1396_s16  ;;  %626 = vrot.lane.b32.xlu0 %v583_v62, %s1396_s16  ;;  %v537_v18 = vsel %vm1581_vm5, 0, %v1577_v14  ;;  %v546_v6 = vsel %vm1581_vm5, 0, %v1566_v1 }
  0x2c   : > { %606 = vrot.lane.b32.xlu1 %v1349_v37, %s1395_s8  ;;  %598 = vrot.lane.b32.xlu0 %v1350_v26, %s1395_s8  ;;  %v809_v26 = vsel %vm807_vm7, %v808_v24, 0 }
  0x2d   : > { %v811_v28 = vand.u32 %v1353_v22, %v809_v26 }
  0x2f   : > { %1274 = vmatprep.subr.bf16.mxu0 %v811_v28  ;;  %1294 = vmatprep.subr.bf16.mxu1 %v811_v28 }
  0x30   : > { %628 = vrot.lane.b32.xlu1 %v584_v7, %s1396_s16  ;;  %608 = vrot.lane.b32.xlu0 %v1351_v44, %s1395_s8 }
  0x31   : > { %1275 = vmatpush3.bf16.msra.mxu0 %v811_v28  ;;  %1296 = vmatpush3.bf16.msra.mxu1 %v811_v28 }
  0x32   : > { %1276 = vmatprep.subr.bf16.mxu0 %v1354_v31  ;;  %1295 = vmatprep.subr.bf16.mxu1 %v1354_v31 }
  0x34   : > { %638 = vrot.lane.b32.xlu1 %v589_v12, %s1396_s16  ;;  %636 = vrot.lane.b32.xlu0 %v588_v15, %s1396_s16 }
  0x35   : > { %1277 = vmatpush3.bf16.msra.mxu0 %v1354_v31  ;;  %1297 = vmatpush3.bf16.msra.mxu1 %v1354_v31 }
  0x38   : > { %620 = vrot.lane.b32.xlu1 %v580_v19, %s1396_s16  ;;  %590 = vrot.lane.b32.xlu0 %v1352_v61, %s1395_s8 }
  0x86   : > { %v595_v20 = vpop.permute.xlu1 %594  ;;  %v593_v21 = vpop.permute.xlu0 %592 }
  0x87   : > { %v646_v35 = vsel %vm640_vm8, %v538_v32, %v593_v21  ;;  %v649_v44 = vsel %vm640_vm8, %v539_v39, %v595_v20 }
  0x8a   : > { %v603_v25 = vpop.permute.xlu1 %602  ;;  %v601_v27 = vpop.permute.xlu0 %600 }
  0x8b   : > { %v658_v33 = vsel %vm640_vm8, %v542_v29, %v601_v27  ;;  %v661_v42 = vsel %vm640_vm8, %v543_v36, %v603_v25 }
  0x8e   : > { %v605_v17 = vpop.permute.xlu1 %604  ;;  %v597_v30 = vpop.permute.xlu0 %596 }
  0x8f   : > { %v664_v51 = vsel %vm640_vm8, %v544_v48, %v605_v17  ;;  %v652_v53 = vsel %vm640_vm8, %v540_v50, %v597_v30 }
  0x92   : > { %v631_v34 = vpop.permute.xlu1 %630  ;;  %v623_v37 = vpop.permute.xlu0 %622 }
  0x93   : > { %v1612_v38 = vsel %vm671_vm9, %v658_v33, %v631_v34  ;;  %v1620_v40 = vsel %vm671_vm9, %v646_v35, %v623_v37 }
  0x94   : > { %708 = vrot.lane.b32.xlu1 %v1612_v38, %s1398_s6  ;;  %700 = vrot.lane.b32.xlu0 %v1620_v40, %s1398_s6 }
  0x96   : > { %v633_v43 = vpop.permute.xlu1 %632  ;;  %v625_v45 = vpop.permute.xlu0 %624 }
  0x97   : > { %v1627_v46 = vsel %vm671_vm9, %v661_v42, %v633_v43  ;;  %v1632_v41 = vsel %vm671_vm9, %v649_v44, %v625_v45  ;;  %v1723_v43 = vld [vmem:[%s1799_s4] ss:$0 sm:$0xff] }
  0x98   : > { %710 = vrot.lane.b32.xlu1 %v1627_v46, %s1398_s6  ;;  %702 = vrot.lane.b32.xlu0 %v1632_v41, %s1398_s6 }
  0x9a   : > { %v635_v47 = vpop.permute.xlu1 %634  ;;  %v627_v49 = vpop.permute.xlu0 %626 }
  0x9b   : > { %v1649_v55 = vsel %vm671_vm9, %v664_v51, %v635_v47  ;;  %v1654_v56 = vsel %vm671_vm9, %v652_v53, %v627_v49 }
  0x9c   : > { %725 = vrot.lane.b32.xlu1 %v1627_v46, %s1399_s7  ;;  %717 = vrot.lane.b32.xlu0 %v1632_v41, %s1399_s7 }
  0x9e   : > { %v607_v52 = vpop.permute.xlu1 %606  ;;  %v599_v54 = vpop.permute.xlu0 %598 }
  0x9f   : > { %v667_v62 = vsel %vm640_vm8, %v545_v59, %v607_v52  ;;  %v655_v2 = vsel %vm640_vm8, %v541_v60, %v599_v54 }
  0xa0   : > { %727 = vrot.lane.b32.xlu1 %v1649_v55, %s1399_s7  ;;  %719 = vrot.lane.b32.xlu0 %v1654_v56, %s1399_s7 }
  0xa2   : > { %v629_v57 = vpop.permute.xlu1 %628  ;;  %v609_v58 = vpop.permute.xlu0 %608 }
  0xa3   : > { %v681_v63 = vsel %vm671_vm9, %v655_v2, %v629_v57  ;;  %v670_v9 = vsel %vm640_vm8, %v546_v6, %v609_v58 }
  0xa4   : > { %712 = vrot.lane.b32.xlu1 %v1649_v55, %s1398_s6  ;;  %704 = vrot.lane.b32.xlu0 %v1654_v56, %s1398_s6 }
  0xa6   : > { %v639_v61 = vpop.permute.xlu1 %638  ;;  %v637_v3 = vpop.permute.xlu0 %636 }
  0xa7   : > { %v689_v4 = vsel %vm671_vm9, %v667_v62, %v637_v3  ;;  %v691_v10 = vsel %vm671_vm9, %v670_v9, %v639_v61 }
  0xa8   : > { %714 = vrot.lane.b32.xlu1 %v689_v4, %s1398_s6  ;;  %706 = vrot.lane.b32.xlu0 %v681_v63, %s1398_s6 }
  0xaa   : > { %v621_v0 = vpop.permute.xlu1 %620  ;;  %v591_v5 = vpop.permute.xlu0 %590 }
  0xab   : > { %v643_v7 = vsel %vm640_vm8, %v537_v18, %v591_v5 }
  0xac   : > { %729 = vrot.lane.b32.xlu1 %v689_v4, %s1399_s7  ;;  %721 = vrot.lane.b32.xlu0 %v681_v63, %s1399_s7  ;;  %v673_v8 = vsel %vm671_vm9, %v643_v7, %v621_v0 }
  0xb0   : > { %731 = vrot.lane.b32.xlu1 %v691_v10, %s1399_s7  ;;  %723 = vrot.lane.b32.xlu0 %v1612_v38, %s1399_s7 }
 0x106   : > { %v709_v1 = vpop.permute.xlu1 %708  ;;  %v701_v11 = vpop.permute.xlu0 %700 }
 0x107   : > { %v743_v14 = vsel %vm733_vm10, %v681_v63, %v709_v1  ;;  %v735_v16 = vsel %vm733_vm10, %v673_v8, %v701_v11 }
 0x10a   : > { %v711_v12 = vpop.permute.xlu1 %710  ;;  %v703_v13 = vpop.permute.xlu0 %702 }
 0x10b   : > { %v745_v21 = vsel %vm733_vm10, %v1612_v38, %v711_v12  ;;  %v737_v23 = vsel %vm733_vm10, %v1620_v40, %v703_v13 }
 0x10e   : > { %v726_v15 = vpop.permute.xlu1 %725  ;;  %v718_v18 = vpop.permute.xlu0 %717 }
 0x10f   : > { %v760_v19 = vsel %vm750_vm11, %v743_v14, %v726_v15  ;;  %v752_v20 = vsel %vm750_vm11, %v735_v16, %v718_v18 }
 0x110   : > { %1286 = vmatprep.mubr.msk.bf16.mxu1 %vm789_vm12, %v760_v19  ;;  %1278 = vmatprep.mubr.msk.bf16.mxu0 %vm789_vm12, %v752_v20 }
 0x112   : > { %v728_v22 = vpop.permute.xlu1 %727  ;;  %v720_v25 = vpop.permute.xlu0 %719 }
 0x113   : > { %v762_v24 = vsel %vm750_vm11, %v745_v21, %v728_v22  ;;  %v754_v26 = vsel %vm750_vm11, %v737_v23, %v720_v25 }
 0x114   : > { %1287 = vmatmul.mubr.msk.bf16.vlgmr.msra.gmra.mxu1 %vm789_vm12, %v762_v24  ;;  %1279 = vmatmul.mubr.msk.bf16.vlgmr.msra.gmra.mxu0 %vm789_vm12, %v754_v26 }
 0x116   : > { %v713_v27 = vpop.permute.xlu1 %712  ;;  %v705_v28 = vpop.permute.xlu0 %704 }
 0x117   : > { %v747_v30 = vsel %vm733_vm10, %v1627_v46, %v713_v27  ;;  %v739_v31 = vsel %vm733_vm10, %v1632_v41, %v705_v28 }
 0x11a   : > { %v715_v17 = vpop.permute.xlu1 %714  ;;  %v707_v29 = vpop.permute.xlu0 %706 }
 0x11b   : > { %v749_v36 = vsel %vm733_vm10, %v1649_v55, %v715_v17  ;;  %v741_v37 = vsel %vm733_vm10, %v1654_v56, %v707_v29 }
 0x11e   : > { %v730_v32 = vpop.permute.xlu1 %729  ;;  %v722_v33 = vpop.permute.xlu0 %721 }
 0x11f   : > { %v764_v34 = vsel %vm750_vm11, %v747_v30, %v730_v32  ;;  %v756_v35 = vsel %vm750_vm11, %v739_v31, %v722_v33 }
 0x120   : > { %1282 = vmatprep.mubr.msk.bf16.mxu0 %vm789_vm12, %v756_v35  ;;  %1290 = vmatprep.mubr.msk.bf16.mxu1 %vm789_vm12, %v764_v34 }
 0x122   : > { %v732_v38 = vpop.permute.xlu1 %731  ;;  %v724_v39 = vpop.permute.xlu0 %723 }
 0x123   : > { %v766_v40 = vsel %vm750_vm11, %v749_v36, %v732_v38  ;;  %v758_v42 = vsel %vm750_vm11, %v741_v37, %v724_v39 }
 0x124   : > { %1283 = vmatmul.mubr.msk.bf16.gmra.mxu0 %vm789_vm12, %v758_v42  ;;  %1291 = vmatmul.mubr.msk.bf16.gmra.mxu1 %vm789_vm12, %v766_v40 }
 0x1d4   : > { %v1288_v44 = vpop.f32.mrf.mxu1  ;;  %v1280_v45 = vpop.f32.mrf.mxu0 }
 0x1d5   : > { %v888_v46 = vadd.f32 %v1288_v44, %v1723_v43  ;;  %v856_v41 = vadd.f32 %v1280_v45, %v1723_v43 }
 0x1d6   : > { %v879_v47 = vpop.f32.mrf.mxu1  ;;  %v847_v49 = vpop.f32.mrf.mxu0 }
 0x1d7   : > { %v920_v48 = vmax.f32 %v888_v46, 0.0  ;;  %v880_v50 = vadd.f32 %v1723_v43, %v879_v47  ;;  %v912_v51 = vmax.f32 %v856_v41, 0.0  ;;  %v848_v52 = vadd.f32 %v1723_v43, %v847_v49 }
 0x1d8   : > { %v1289_v53 = vpop.f32.mrf.mxu1  ;;  %v1281_v56 = vpop.f32.mrf.mxu0 }
 0x1d9   : > { %v1258_v54 = vpack.c.bf16 %v920_v48, %v920_v48  ;;  %v918_v55 = vmax.f32 %v880_v50, 0.0  ;;  %v891_v57 = vadd.f32 %v1289_v53, %v1723_v43  ;;  %v1250_v58 = vpack.c.bf16 %v912_v51, %v912_v51 }
 0x1da   : > { %v910_v59 = vmax.f32 %v848_v52, 0.0  ;;  %v859_v60 = vadd.f32 %v1281_v56, %v1723_v43  ;;  %v882_v61 = vpop.f32.mrf.mxu1  ;;  %v850_v3 = vpop.f32.mrf.mxu0 }
 0x1db   : > { %1001 = vst.msk [vmem:[%s1733_s12 + $0x28] sm:$0xf] %vm990_vm13, %v1258_v54  ;;  %v1256_v62 = vpack.c.bf16 %v918_v55, %v918_v55  ;;  %v921_v2 = vmax.f32 %v891_v57, 0.0  ;;  %v883_v4 = vadd.f32 %v1723_v43, %v882_v61  ;;  %993 = vst.msk [vmem:[%s1733_s12 + $0x8] sm:$0xf] %vm990_vm13, %v1250_v58  ;;  %v851_v5 = vadd.f32 %v1723_v43, %v850_v3 }
 0x1dc   : > { %v1248_v63 = vpack.c.bf16 %v910_v59, %v910_v59  ;;  %v913_v0 = vmax.f32 %v859_v60, 0.0 }
 0x1dd   : > { %999 = vst.msk [vmem:[%s1733_s12 + $0x20] sm:$0xf] %vm990_vm13, %v1256_v62  ;;  %v1259_v6 = vpack.c.bf16 %v921_v2, %v921_v2  ;;  %v919_v7 = vmax.f32 %v883_v4, 0.0  ;;  %v911_v9 = vmax.f32 %v851_v5, 0.0 }
 0x1de   : > { %991 = vst.msk [vmem:[%s1733_s12] sm:$0xf] %vm990_vm13, %v1248_v63  ;;  %v1251_v8 = vpack.c.bf16 %v913_v0, %v913_v0 }
 0x1df   : > { %1002 = vst.msk [vmem:[%s1733_s12 + $0x2c] sm:$0xf] %vm990_vm13, %v1259_v6  ;;  %v1257_v10 = vpack.c.bf16 %v919_v7, %v919_v7  ;;  %v1249_v1 = vpack.c.bf16 %v911_v9, %v911_v9 }
 0x1e0   : > { %994 = vst.msk [vmem:[%s1733_s12 + $0xc] sm:$0xf] %vm990_vm13, %v1251_v8 }
 0x1e1   : > { %1000 = vst.msk [vmem:[%s1733_s12 + $0x24] sm:$0xf] %vm990_vm13, %v1257_v10  ;;  %992 = vst.msk [vmem:[%s1733_s12 + $0x4] sm:$0xf] %vm990_vm13, %v1249_v1 }
 0x1e4   : > { %v1284_v11 = vpop.f32.mrf.mxu0  ;;  %v1292_v12 = vpop.f32.mrf.mxu1 }
 0x1e5   : > { %v872_v13 = vadd.f32 %v1284_v11, %v1723_v43  ;;  %v904_v14 = vadd.f32 %v1292_v12, %v1723_v43 }
 0x1e6   : > { %v863_v15 = vpop.f32.mrf.mxu0  ;;  %v895_v16 = vpop.f32.mrf.mxu1 }
 0x1e7   : > { %v916_v18 = vmax.f32 %v872_v13, 0.0  ;;  %v924_v19 = vmax.f32 %v904_v14, 0.0  ;;  %v864_v20 = vadd.f32 %v1723_v43, %v863_v15  ;;  %v896_v21 = vadd.f32 %v1723_v43, %v895_v16 }
 0x1e8   : > { %v1285_v22 = vpop.f32.mrf.mxu0  ;;  %v1293_v23 = vpop.f32.mrf.mxu1 }
 0x1e9   : > { %v1254_v24 = vpack.c.bf16 %v916_v18, %v916_v18  ;;  %v1262_v25 = vpack.c.bf16 %v924_v19, %v924_v19  ;;  %v914_v26 = vmax.f32 %v864_v20, 0.0  ;;  %v922_v27 = vmax.f32 %v896_v21, 0.0 }
 0x1ea   : > { %v875_v28 = vadd.f32 %v1285_v22, %v1723_v43  ;;  %v907_v17 = vadd.f32 %v1293_v23, %v1723_v43  ;;  %v866_v29 = vpop.f32.mrf.mxu0  ;;  %v898_v30 = vpop.f32.mrf.mxu1 }
 0x1eb   : > { %997 = vst.msk [vmem:[%s1733_s12 + $0x18] sm:$0xf] %vm990_vm13, %v1254_v24  ;;  %1005 = vst.msk [vmem:[%s1733_s12 + $0x38] sm:$0xf] %vm990_vm13, %v1262_v25  ;;  %v1252_v31 = vpack.c.bf16 %v914_v26, %v914_v26  ;;  %v1260_v32 = vpack.c.bf16 %v922_v27, %v922_v27  ;;  %v867_v33 = vadd.f32 %v1723_v43, %v866_v29 }
 0x1ec   : > { %v899_v34 = vadd.f32 %v1723_v43, %v898_v30  ;;  %v917_v35 = vmax.f32 %v875_v28, 0.0  ;;  %v925_v36 = vmax.f32 %v907_v17, 0.0 }
 0x1ed   : > { %995 = vst.msk [vmem:[%s1733_s12 + $0x10] sm:$0xf] %vm990_vm13, %v1252_v31  ;;  %1003 = vst.msk [vmem:[%s1733_s12 + $0x30] sm:$0xf] %vm990_vm13, %v1260_v32  ;;  %v915_v37 = vmax.f32 %v867_v33, 0.0 }
 0x1ee   : > { %v923_v38 = vmax.f32 %v899_v34, 0.0  ;;  %v1255_v39 = vpack.c.bf16 %v917_v35, %v917_v35  ;;  %v1263_v40 = vpack.c.bf16 %v925_v36, %v925_v36 }
 0x1ef   : > { %v1253_v42 = vpack.c.bf16 %v915_v37, %v915_v37 }
 0x1f0   : > { %v1261_v44 = vpack.c.bf16 %v923_v38, %v923_v38  ;;  %998 = vst.msk [vmem:[%s1733_s12 + $0x1c] sm:$0xf] %vm990_vm13, %v1255_v39  ;;  %1006 = vst.msk [vmem:[%s1733_s12 + $0x3c] sm:$0xf] %vm990_vm13, %v1263_v40 }
 0x1f1   : > { %996 = vst.msk [vmem:[%s1733_s12 + $0x14] sm:$0xf] %vm990_vm13, %v1253_v42 }
 0x1f2   : > { %1004 = vst.msk [vmem:[%s1733_s12 + $0x34] sm:$0xf] %vm990_vm13, %v1261_v44 }
 0x1f3 PF: > { %s15_s22 = sadd.s32 1, %s1393_s22   ;;  %s1805_s18 = smov %s1385_s20 }
 0x1f4   : > { %p12_p8 = scmp.ge.s32.totalorder %s15_s22, 6   ;;  %s1806_s19 = smov %s1389_s21 }
 0x1f5   : > { %s1807_s20 = smov %s1810_s23  ;;  %s1808_s21 = smov %s1814_s24 }
 0x1f6   :  { %14 = sbr.rel (!%p12_p8) target bundleno = 3 (0x3), region = 82 }

</bundles_post_ra>
